<compile_context>
chip_gen: v7x
topology: tpu7x:2x2x1
jax: 0.10.0
libtpu: 0.0.40
codegen_flags: <defaults>
</compile_context>

<pallas_src>
import functools

import jax
import jax.numpy as jnp
from jax.experimental import pallas as pl
from jax.experimental.pallas import tpu as pltpu

_NEG_BIG = -1e30  # large negative (safer than -inf for the online max/exp)


def _round_up(x, m):
    return (x + m - 1) // m * m


def _uce_kernel(x_ref, w_ref, wscale_ref, lbl_ref, out_ref,
                xn_ref, m_ref, l_ref, t_ref,
                *, sm, eps, n_valid_rows, n_classes, precision):
    """Grid = (batch tiles, class tiles); class axis is the reduction axis."""
    b = pl.program_id(0)
    c = pl.program_id(1)
    b_tile = x_ref.shape[0]
    c_tile = w_ref.shape[0]

    # ---- per-batch-tile init (runs once per b, at the first class tile) ----
    @pl.when(c == 0)
    def _init():
        x = x_ref[...].astype(jnp.float32)
        # F.normalize(x, eps): x / max(||x||_2, eps), row-wise.
        inv = 1.0 / jnp.maximum(
            jnp.sqrt(jnp.sum(x * x, axis=-1, keepdims=True)), eps)
        xn_ref[...] = (x * inv).astype(xn_ref.dtype)
        m_ref[...] = jnp.full_like(m_ref, _NEG_BIG)
        l_ref[...] = jnp.zeros_like(l_ref)
        t_ref[...] = jnp.zeros_like(t_ref)

    # ---- MXU: (b_tile, D) . (c_tile, D) contracted on D -> (b_tile, c_tile)
    # (no transpose: contraction is on the last dim of both operands).
    cos = jax.lax.dot_general(
        xn_ref[...], w_ref[...],
        dimension_numbers=(((1,), (1,)), ((), ())),
        precision=precision,
        preferred_element_type=jnp.float32)

    # Column scale = s / max(||w_j||, eps), precomputed outside the kernel.
    logits = cos * wscale_ref[...]                      # (1, c_tile) broadcast

    # Margin only on the target column of this tile (compare, not one-hot mul).
    # Label lives in a tiny VMEM (b_tile, 1) int32 tile because it is needed
    # as a vector operand for the lane-wise compare below.
    cls = c * c_tile + jax.lax.broadcasted_iota(jnp.int32, (b_tile, c_tile), 1)
    lbl = lbl_ref[...]                                  # (b_tile, 1) int32
    is_tgt = cls == lbl
    logits = jnp.where(is_tgt, logits - sm, logits)
    masked = jnp.where(cls < n_classes, logits, _NEG_BIG)   # mask padded classes

    # ---- online logsumexp update ----
    m_prev = m_ref[...]
    m_new = jnp.maximum(m_prev, jnp.max(masked, axis=-1, keepdims=True))
    alpha = jnp.exp(m_prev - m_new)
    l_ref[...] = l_ref[...] * alpha + jnp.sum(
        jnp.exp(masked - m_new), axis=-1, keepdims=True)
    t_ref[...] = t_ref[...] + jnp.sum(
        jnp.where(is_tgt, logits, 0.0), axis=-1, keepdims=True)
    m_ref[...] = m_new

    # ---- finalize: per-row loss, masked for padded rows, lane-dense store ----
    @pl.when(c == pl.num_programs(1) - 1)
    def _finalize():
        lse = m_ref[...] + jnp.log(l_ref[...])
        loss_rows = lse - t_ref[...]                    # (b_tile, 1)
        rows = b * b_tile + jax.lax.broadcasted_iota(jnp.int32, (b_tile, 1), 0)
        loss_rows = jnp.where(rows < n_valid_rows, loss_rows, 0.0)
        out_ref[...] = jnp.broadcast_to(loss_rows, out_ref.shape)


def unified_cross_entropy_loss(x, weight, label, *, m=0.4, s=64.0, eps=1e-5,
                               b_tile=None, c_tile=None,
                               mxu_dtype=jnp.float32):
    """Pallas implementation of Unified_Cross_Entropy_Loss.forward.

    x:      (B, D) float   -- `input`
    weight: (C, D) float   -- module weight (out_features, in_features)
    label:  (B,)   int     -- class indices in [0, C)  (precondition, like torch)
    returns scalar float32 mean cross-entropy loss.
    """
    B, D = x.shape
    C, D2 = weight.shape
    assert D == D2

    # Tile sizes: multiples of 8 (sublanes); defaults are 256/512 (MXU-friendly
    # and comfortably inside v7x's 64 MiB VMEM), shrunk for tiny problems.
    if b_tile is None:
        b_tile = 256 if B >= 256 else _round_up(B, 8)
    if c_tile is None:
        c_tile = 512 if C >= 512 else _round_up(C, 8)
    b_pad = _round_up(B, b_tile)
    c_pad = _round_up(C, c_tile)

    x = x.astype(jnp.float32)
    w = weight.astype(jnp.float32)

    # Per-class inverse norm, fused with the logit scale s (one XLA pass over W).
    w_scale = s / jnp.maximum(jnp.sqrt(jnp.sum(w * w, axis=-1)), eps)     # (C,)

    # Pad to tile multiples (padded rows/classes are masked in the kernel).
    xp = jnp.pad(x, ((0, b_pad - B), (0, 0)))
    wp = jnp.pad(w, ((0, c_pad - C), (0, 0))).astype(mxu_dtype)
    wsp = jnp.pad(w_scale, (0, c_pad - C)).reshape(1, c_pad).astype(jnp.float32)
    lblp = jnp.pad(label.astype(jnp.int32).reshape(B, 1),
                   ((0, b_pad - B), (0, 0)), constant_values=-1)

    nb = b_pad // b_tile
    nc = c_pad // c_tile

    precision = (jax.lax.Precision.HIGHEST if mxu_dtype == jnp.float32
                 else jax.lax.Precision.DEFAULT)

    kernel = functools.partial(
        _uce_kernel, sm=float(s) * float(m), eps=float(eps),
        n_valid_rows=B, n_classes=C, precision=precision)

    # Scoped-VMEM budget: double-buffered input tiles + scratch + logits temps,
    # with headroom, clamped to stay inside v7x's 64 MiB physical VMEM.
    it = jnp.dtype(mxu_dtype).itemsize
    est = 2 * (b_tile * D * 4 + c_tile * D * it + c_tile * 4
               + b_tile * 4 + b_tile * 128 * 4)
    est += b_tile * D * it + 3 * b_tile * 128 * 4
    est += 3 * b_tile * c_tile * 4
    vmem_limit = min(max(int(1.5 * est) + (2 << 20), 16 << 20), 64 << 20)

    out = pl.pallas_call(
        kernel,
        out_shape=jax.ShapeDtypeStruct((b_pad, 128), jnp.float32),
        grid_spec=pltpu.PrefetchScalarGridSpec(
            num_scalar_prefetch=0,
            grid=(nb, nc),
            in_specs=[
                pl.BlockSpec((b_tile, D), lambda b, c: (b, 0)),    # x
                pl.BlockSpec((c_tile, D), lambda b, c: (c, 0)),    # weight
                pl.BlockSpec((1, c_tile), lambda b, c: (0, c)),    # s / ||w_j||
                pl.BlockSpec((b_tile, 1), lambda b, c: (b, 0)),    # label
            ],
            out_specs=pl.BlockSpec((b_tile, 128), lambda b, c: (b, 0)),
            scratch_shapes=[
                pltpu.VMEM((b_tile, D), mxu_dtype),     # normalized x tile
                pltpu.VMEM((b_tile, 1), jnp.float32),   # running max
                pltpu.VMEM((b_tile, 1), jnp.float32),   # running sum(exp)
                pltpu.VMEM((b_tile, 1), jnp.float32),   # target logit
            ],
        ),
        compiler_params=pltpu.CompilerParams(
            dimension_semantics=("parallel", "arbitrary"),
            vmem_limit_bytes=vmem_limit,
        ),
    )(xp, wp, wsp, lblp)

    # Per-row partial losses live in lane 0 of each row; mean over true batch.
    return jnp.sum(out[:, 0]) / B


def init_weight(key, out_features, in_features):
    # kaiming_normal_(a=1, mode='fan_in', nonlinearity='leaky_relu'):
    #   gain = sqrt(2 / (1 + a^2)) = 1 ; std = gain / sqrt(fan_in)
    std = 1.0 / jnp.sqrt(jnp.float32(in_features))
    return std * jax.random.normal(key, (out_features, in_features),
                                   dtype=jnp.float32)


def _reference(x, w, label, m=0.4, s=64.0, eps=1e-5):
    # Faithful JAX mirror of the torch module.
    xn = x / jnp.maximum(jnp.linalg.norm(x, axis=-1, keepdims=True), eps)
    wn = w / jnp.maximum(jnp.linalg.norm(w, axis=-1, keepdims=True), eps)
    cos = jnp.matmul(xn, wn.T, precision=jax.lax.Precision.HIGHEST)
    oh = jax.nn.one_hot(label, w.shape[0], dtype=jnp.float32)
    logits = s * (cos - m * oh)
    logp = jax.nn.log_softmax(logits, axis=-1)
    return -jnp.mean(jnp.sum(oh * logp, axis=-1))


if __name__ == "__main__":
    key = jax.random.PRNGKey(0)

    # --- case 1: tiny single-tile shape (module-sized smoke test) ---
    B, D, C = 8, 32, 16
    kx, kw, kl = jax.random.split(jax.random.fold_in(key, 1), 3)
    x = jax.random.normal(kx, (B, D), dtype=jnp.float32)
    weight = init_weight(kw, C, D)
    label = jax.random.randint(kl, (B,), 0, C, dtype=jnp.int32)

    loss = unified_cross_entropy_loss(x, weight, label, m=0.4, s=64.0)
    loss = jax.block_until_ready(loss)
    ref_loss = _reference(x, weight, label)
    assert jnp.allclose(loss, ref_loss, rtol=1e-3, atol=1e-3), (loss, ref_loss)

    # --- case 2: multi-tile grid (exercises online LSE + padding masks) ---
    B2, D2, C2 = 20, 128, 300
    kx2, kw2, kl2 = jax.random.split(jax.random.fold_in(key, 2), 3)
    x2 = jax.random.normal(kx2, (B2, D2), dtype=jnp.float32)
    w2 = init_weight(kw2, C2, D2)
    l2 = jax.random.randint(kl2, (B2,), 0, C2, dtype=jnp.int32)

    loss2 = unified_cross_entropy_loss(x2, w2, l2, m=0.4, s=64.0,
                                       b_tile=8, c_tile=128)
    loss2 = jax.block_until_ready(loss2)
    ref_loss2 = _reference(x2, w2, l2)
    assert jnp.allclose(loss2, ref_loss2, rtol=1e-3, atol=1e-3), (loss2, ref_loss2)

    print("KERNEL_OK")
</pallas_src>

<mosaic_0001>
module attributes {stable_mosaic.version = 11 : i64} {
  func.func @_uce_kernel(%arg0: i32, %arg1: i32, %arg2: memref<8x32xf32, #tpu.memory_space<vmem>>, %arg3: memref<16x32xf32, #tpu.memory_space<vmem>>, %arg4: memref<1x16xf32, #tpu.memory_space<vmem>>, %arg5: memref<8x1xi32, #tpu.memory_space<vmem>>, %arg6: memref<8x128xf32, #tpu.memory_space<vmem>>, %arg7: memref<8x32xf32, #tpu.memory_space<vmem>>, %arg8: memref<8x1xf32, #tpu.memory_space<vmem>>, %arg9: memref<8x1xf32, #tpu.memory_space<vmem>>, %arg10: memref<8x1xf32, #tpu.memory_space<vmem>>) attributes {dimension_semantics = [#tpu.dimension_semantics<parallel>, #tpu.dimension_semantics<arbitrary>], iteration_bounds = array<i64: 1, 1>, scalar_prefetch = 0 : i64, scratch_operands = 4 : i64, tpu.core_type = #tpu.core_type<tc>, window_params = [{transform_indices = @transform_0, window_bounds = array<i64: 8, 32>}, {transform_indices = @transform_1, window_bounds = array<i64: 16, 32>}, {transform_indices = @transform_2, window_bounds = array<i64: 1, 16>}, {transform_indices = @transform_3, window_bounds = array<i64: 8, 1>}, {transform_indices = @transform_4, window_bounds = array<i64: 8, 128>}]} {
    %c0_i32 = arith.constant 0 : i32
    %0 = arith.cmpi eq, %arg1, %c0_i32 : i32
    %1 = arith.extui %0 : i1 to i32
    %c0_i32_0 = arith.constant 0 : i32
    %2 = arith.cmpi ne, %1, %c0_i32_0 : i32
    scf.if %2 {
      %c0_29 = arith.constant 0 : index
      %c0_30 = arith.constant 0 : index
      %49 = vector.load %arg2[%c0_29, %c0_30] : memref<8x32xf32, #tpu.memory_space<vmem>>, vector<8x32xf32>
      %50 = arith.mulf %49, %49 : vector<8x32xf32>
      %cst_31 = arith.constant dense<0.000000e+00> : vector<8xf32>
      %51 = vector.multi_reduction <add>, %50, %cst_31 [1] : vector<8x32xf32> to vector<8xf32>
      %52 = vector.shape_cast %51 : vector<8xf32> to vector<8x1xf32>
      %53 = math.sqrt %52 : vector<8x1xf32>
      %cst_32 = arith.constant 9.99999974E-6 : f32
      %54 = vector.broadcast %cst_32 : f32 to vector<8x1xf32>
      %55 = arith.maximumf %53, %54 : vector<8x1xf32>
      %cst_33 = arith.constant 1.000000e+00 : f32
      %56 = vector.broadcast %cst_33 : f32 to vector<8x1xf32>
      %57 = arith.divf %56, %55 : vector<8x1xf32>
      %58 = vector.broadcast %57 : vector<8x1xf32> to vector<8x32xf32>
      %59 = arith.mulf %49, %58 : vector<8x32xf32>
      %c0_34 = arith.constant 0 : index
      %c0_35 = arith.constant 0 : index
      %60 = vector.load %arg7[%c0_34, %c0_35] : memref<8x32xf32, #tpu.memory_space<vmem>>, vector<8x32xf32>
      tpu.vector_store %arg7[%c0_34, %c0_35], %59 {strides = array<i32>} : memref<8x32xf32, #tpu.memory_space<vmem>>, vector<8x32xf32>,
      %cst_36 = arith.constant -1.000000e+30 : f32
      %61 = vector.broadcast %cst_36 : f32 to vector<8x1xf32>
      %c0_37 = arith.constant 0 : index
      %c0_38 = arith.constant 0 : index
      %62 = vector.load %arg8[%c0_37, %c0_38] : memref<8x1xf32, #tpu.memory_space<vmem>>, vector<8x1xf32>
      tpu.vector_store %arg8[%c0_37, %c0_38], %61 {strides = array<i32>} : memref<8x1xf32, #tpu.memory_space<vmem>>, vector<8x1xf32>,
      %cst_39 = arith.constant 0.000000e+00 : f32
      %63 = vector.broadcast %cst_39 : f32 to vector<8x1xf32>
      %c0_40 = arith.constant 0 : index
      %c0_41 = arith.constant 0 : index
      %64 = vector.load %arg9[%c0_40, %c0_41] : memref<8x1xf32, #tpu.memory_space<vmem>>, vector<8x1xf32>
      tpu.vector_store %arg9[%c0_40, %c0_41], %63 {strides = array<i32>} : memref<8x1xf32, #tpu.memory_space<vmem>>, vector<8x1xf32>,
      %cst_42 = arith.constant 0.000000e+00 : f32
      %65 = vector.broadcast %cst_42 : f32 to vector<8x1xf32>
      %c0_43 = arith.constant 0 : index
      %c0_44 = arith.constant 0 : index
      %66 = vector.load %arg10[%c0_43, %c0_44] : memref<8x1xf32, #tpu.memory_space<vmem>>, vector<8x1xf32>
      tpu.vector_store %arg10[%c0_43, %c0_44], %65 {strides = array<i32>} : memref<8x1xf32, #tpu.memory_space<vmem>>, vector<8x1xf32>,
    } else {
    }
    %c0 = arith.constant 0 : index
    %c0_1 = arith.constant 0 : index
    %3 = vector.load %arg7[%c0, %c0_1] : memref<8x32xf32, #tpu.memory_space<vmem>>, vector<8x32xf32>
    %c0_2 = arith.constant 0 : index
    %c0_3 = arith.constant 0 : index
    %4 = vector.load %arg3[%c0_2, %c0_3] : memref<16x32xf32, #tpu.memory_space<vmem>>, vector<16x32xf32>
    %cst = arith.constant dense<0.000000e+00> : vector<8x16xf32>
    %5 = tpu.matmul %3, %4, %cst {dimension_numbers = #tpu.dot_dimension_numbers<[1], [1], [0], [0], [0, 0, 1, 0], [], []>, precision = #tpu.contract_precision<fp32>} : vector<8x32xf32>, vector<16x32xf32>, vector<8x16xf32> -> vector<8x16xf32>
    %c0_4 = arith.constant 0 : index
    %c0_5 = arith.constant 0 : index
    %6 = vector.load %arg4[%c0_4, %c0_5] : memref<1x16xf32, #tpu.memory_space<vmem>>, vector<1x16xf32>
    %7 = vector.broadcast %6 : vector<1x16xf32> to vector<8x16xf32>
    %8 = arith.mulf %5, %7 : vector<8x16xf32>
    %c16_i32 = arith.constant 16 : i32
    %9 = arith.muli %arg1, %c16_i32 : i32
    %10 = tpu.iota {dimensions = array<i32: 1>} : vector<8x16xi32>
    %11 = vector.broadcast %9 : i32 to vector<8x16xi32>
    %12 = arith.addi %11, %10 : vector<8x16xi32>
    %c0_6 = arith.constant 0 : index
    %c0_7 = arith.constant 0 : index
    %13 = vector.load %arg5[%c0_6, %c0_7] : memref<8x1xi32, #tpu.memory_space<vmem>>, vector<8x1xi32>
    %14 = vector.broadcast %13 : vector<8x1xi32> to vector<8x16xi32>
    %15 = arith.cmpi eq, %12, %14 : vector<8x16xi32>
    %cst_8 = arith.constant 2.560000e+01 : f32
    %16 = vector.broadcast %cst_8 : f32 to vector<8x16xf32>
    %17 = arith.subf %8, %16 : vector<8x16xf32>
    %18 = arith.select %15, %17, %8 : vector<8x16xi1>, vector<8x16xf32>
    %c16_i32_9 = arith.constant 16 : i32
    %19 = vector.broadcast %c16_i32_9 : i32 to vector<8x16xi32>
    %20 = arith.cmpi slt, %12, %19 : vector<8x16xi32>
    %cst_10 = arith.constant -1.000000e+30 : f32
    %21 = vector.broadcast %cst_10 : f32 to vector<8x16xf32>
    %22 = arith.select %20, %18, %21 : vector<8x16xi1>, vector<8x16xf32>
    %c0_11 = arith.constant 0 : index
    %c0_12 = arith.constant 0 : index
    %23 = vector.load %arg8[%c0_11, %c0_12] : memref<8x1xf32, #tpu.memory_space<vmem>>, vector<8x1xf32>
    %cst_13 = arith.constant dense<0xFF800000> : vector<8xf32>
    %24 = vector.multi_reduction <maximumf>, %22, %cst_13 [1] : vector<8x16xf32> to vector<8xf32>
    %25 = vector.shape_cast %24 : vector<8xf32> to vector<8x1xf32>
    %26 = arith.maximumf %23, %25 : vector<8x1xf32>
    %27 = arith.subf %23, %26 : vector<8x1xf32>
    %28 = math.exp %27 : vector<8x1xf32>
    %c0_14 = arith.constant 0 : index
    %c0_15 = arith.constant 0 : index
    %29 = vector.load %arg9[%c0_14, %c0_15] : memref<8x1xf32, #tpu.memory_space<vmem>>, vector<8x1xf32>
    %30 = arith.mulf %29, %28 : vector<8x1xf32>
    %31 = vector.broadcast %26 : vector<8x1xf32> to vector<8x16xf32>
    %32 = arith.subf %22, %31 : vector<8x16xf32>
    %33 = math.exp %32 : vector<8x16xf32>
    %cst_16 = arith.constant dense<0.000000e+00> : vector<8xf32>
    %34 = vector.multi_reduction <add>, %33, %cst_16 [1] : vector<8x16xf32> to vector<8xf32>
    %35 = vector.shape_cast %34 : vector<8xf32> to vector<8x1xf32>
    %36 = arith.addf %30, %35 : vector<8x1xf32>
    %c0_17 = arith.constant 0 : index
    %c0_18 = arith.constant 0 : index
    %37 = vector.load %arg9[%c0_17, %c0_18] : memref<8x1xf32, #tpu.memory_space<vmem>>, vector<8x1xf32>
    tpu.vector_store %arg9[%c0_17, %c0_18], %36 {strides = array<i32>} : memref<8x1xf32, #tpu.memory_space<vmem>>, vector<8x1xf32>,
    %c0_19 = arith.constant 0 : index
    %c0_20 = arith.constant 0 : index
    %38 = vector.load %arg10[%c0_19, %c0_20] : memref<8x1xf32, #tpu.memory_space<vmem>>, vector<8x1xf32>
    %cst_21 = arith.constant 0.000000e+00 : f32
    %39 = vector.broadcast %cst_21 : f32 to vector<8x16xf32>
    %40 = arith.select %15, %18, %39 : vector<8x16xi1>, vector<8x16xf32>
    %cst_22 = arith.constant dense<0.000000e+00> : vector<8xf32>
    %41 = vector.multi_reduction <add>, %40, %cst_22 [1] : vector<8x16xf32> to vector<8xf32>
    %42 = vector.shape_cast %41 : vector<8xf32> to vector<8x1xf32>
    %43 = arith.addf %38, %42 : vector<8x1xf32>
    %c0_23 = arith.constant 0 : index
    %c0_24 = arith.constant 0 : index
    %44 = vector.load %arg10[%c0_23, %c0_24] : memref<8x1xf32, #tpu.memory_space<vmem>>, vector<8x1xf32>
    tpu.vector_store %arg10[%c0_23, %c0_24], %43 {strides = array<i32>} : memref<8x1xf32, #tpu.memory_space<vmem>>, vector<8x1xf32>,
    %c0_25 = arith.constant 0 : index
    %c0_26 = arith.constant 0 : index
    %45 = vector.load %arg8[%c0_25, %c0_26] : memref<8x1xf32, #tpu.memory_space<vmem>>, vector<8x1xf32>
    tpu.vector_store %arg8[%c0_25, %c0_26], %26 {strides = array<i32>} : memref<8x1xf32, #tpu.memory_space<vmem>>, vector<8x1xf32>,
    %c0_i32_27 = arith.constant 0 : i32
    %46 = arith.cmpi eq, %arg1, %c0_i32_27 : i32
    %47 = arith.extui %46 : i1 to i32
    %c0_i32_28 = arith.constant 0 : i32
    %48 = arith.cmpi ne, %47, %c0_i32_28 : i32
    scf.if %48 {
      %c0_29 = arith.constant 0 : index
      %c0_30 = arith.constant 0 : index
      %49 = vector.load %arg8[%c0_29, %c0_30] : memref<8x1xf32, #tpu.memory_space<vmem>>, vector<8x1xf32>
      %c0_31 = arith.constant 0 : index
      %c0_32 = arith.constant 0 : index
      %50 = vector.load %arg9[%c0_31, %c0_32] : memref<8x1xf32, #tpu.memory_space<vmem>>, vector<8x1xf32>
      %51 = math.log %50 : vector<8x1xf32>
      %52 = arith.addf %49, %51 : vector<8x1xf32>
      %c0_33 = arith.constant 0 : index
      %c0_34 = arith.constant 0 : index
      %53 = vector.load %arg10[%c0_33, %c0_34] : memref<8x1xf32, #tpu.memory_space<vmem>>, vector<8x1xf32>
      %54 = arith.subf %52, %53 : vector<8x1xf32>
      %c8_i32 = arith.constant 8 : i32
      %55 = arith.muli %arg0, %c8_i32 : i32
      %56 = tpu.iota {dimensions = array<i32: 0>} : vector<8x1xi32>
      %57 = vector.broadcast %55 : i32 to vector<8x1xi32>
      %58 = arith.addi %57, %56 : vector<8x1xi32>
      %c8_i32_35 = arith.constant 8 : i32
      %59 = vector.broadcast %c8_i32_35 : i32 to vector<8x1xi32>
      %60 = arith.cmpi slt, %58, %59 : vector<8x1xi32>
      %cst_36 = arith.constant 0.000000e+00 : f32
      %61 = vector.broadcast %cst_36 : f32 to vector<8x1xf32>
      %62 = arith.select %60, %54, %61 : vector<8x1xi1>, vector<8x1xf32>
      %63 = vector.shape_cast %62 : vector<8x1xf32> to vector<8x1xf32>
      %64 = vector.broadcast %63 : vector<8x1xf32> to vector<8x128xf32>
      %c0_37 = arith.constant 0 : index
      %c0_38 = arith.constant 0 : index
      %65 = vector.load %arg6[%c0_37, %c0_38] : memref<8x128xf32, #tpu.memory_space<vmem>>, vector<8x128xf32>
      tpu.vector_store %arg6[%c0_37, %c0_38], %64 {strides = array<i32>} : memref<8x128xf32, #tpu.memory_space<vmem>>, vector<8x128xf32>,
    } else {
    }
    return
  }
  func.func @transform_0(%arg0: i32, %arg1: i32) -> (i32, i32) {
    %c0_i32 = arith.constant 0 : i32
    %c0_i32_0 = arith.constant 0 : i32
    return %arg0, %c0_i32 : i32, i32
  }
  func.func @transform_1(%arg0: i32, %arg1: i32) -> (i32, i32) {
    %c0_i32 = arith.constant 0 : i32
    %c0_i32_0 = arith.constant 0 : i32
    return %arg1, %c0_i32 : i32, i32
  }
  func.func @transform_2(%arg0: i32, %arg1: i32) -> (i32, i32) {
    %c0_i32 = arith.constant 0 : i32
    %c0_i32_0 = arith.constant 0 : i32
    return %c0_i32, %arg1 : i32, i32
  }
  func.func @transform_3(%arg0: i32, %arg1: i32) -> (i32, i32) {
    %c0_i32 = arith.constant 0 : i32
    %c0_i32_0 = arith.constant 0 : i32
    return %arg0, %c0_i32 : i32, i32
  }
  func.func @transform_4(%arg0: i32, %arg1: i32) -> (i32, i32) {
    %c0_i32 = arith.constant 0 : i32
    %c0_i32_0 = arith.constant 0 : i32
    return %arg0, %c0_i32 : i32, i32
  }
}

</mosaic_0001>

<bundles_post_ra>
// kernel: tpu_custom_call.1
= control target key start
LH: loop header
LB: loop body
LE: loop exit
PB: predicated region body
PF: predicated region fallthrough
CT: control target
= control target key end

     0   :  { %9 = vsyncpa [#allocation7], 0  ;;  %s876_s0 = inlined_call_operand.vmem [shape: f32[8,32], index: 0, kind: input, shape index: {}]   ;;  %s877_s1 = inlined_call_operand.hbm [shape: f32[16,32], index: 1, kind: input, shape index: {}]   ;;  %s878_s2 = inlined_call_operand.vmem [shape: f32[1,16], index: 2, kind: input, shape index: {}]   ;;  %s879_s3 = inlined_call_operand.vmem [shape: s32[8,1], index: 3, kind: input, shape index: {}]   ;;  %s880_s4 = inlined_call_operand.hbm [shape: f32[8,128], index: 4, kind: output, shape index: {}]  }
   0x1   :  { %10 = vsyncpa [#allocation8], 0  ;;  %s781_s15 = smov [#allocation6]   ;;  %s733_s19 = scalar_lea.hbm %s877_s1, 256 }
   0x2   :  { %s18_s16 = sshll.u32 %s781_s15, 4  ;;  %p734_p0 = scmp.ne.s32.totalorder %s877_s1, %s733_s19  ;;  %s19_s16 = int_to_ptr.vmem [resolvable:$true] %s18_s16 }
   0x3   :  { %p737_p1 = scmp.lt.u32.totalorder %s733_s19, %s877_s1 }
   0x5   :  { %p739_p2 = pnand %p737_p1, %p734_p0 }
   0x7   :  { %742 = shalt.err (!%p739_p2)
}
   0x8   :  { %s743_s24 = scalar_lea.vmem %s19_s16, 256  ;;  %p748_p4 = scmp.lt.s32.totalorder %s19_s16, %s19_s16 }
   0x9   :  { %p744_p3 = scmp.ne.s32.totalorder %s19_s16, %s743_s24  ;;  %p749_p5 = scmp.lt.s32.totalorder %s743_s24, %s743_s24 }
   0xb   :  { %p750_p6 = por %p749_p5, %p748_p4 }
   0xd   :  { %p751_p7 = pnand %p750_p6, %p744_p3 }
   0xf   :  { %754 = shalt.err (!%p751_p7)
}
  0x10   :  { %s782_s25 = smov 128   ;;  %s783_s26 = smov 8  }
  0x11   :  { %24 = dma.hbm_to_vmem [thread:$0]  %s877_s1, 256, %s19_s16, [#allocation7], %s782_s25, %s782_s25, %s783_s26  }
  0x12   :  { %777 = dma.done.wait [#allocation7], 256  }
  0x13   :  { %778 = vsyncadd [#allocation7], 4294967040  ;;  %v36_v0 = vld [vmem:[%s876_s0] sm:$0xff]  ;;  %vm38_vm0 = vcmask 261120   ;;  %v60_v4 = vld [vmem:[#allocation6 + $0x8] sm:$0xff]  ;;  %v784_v5 = vmov 0.0|0.0   ;;  %v539_v42 = vlaneseq }
  0x14   :  { %v37_v1 = vmul.f32 %v36_v0, %v36_v0  ;;  %v59_v3 = vld [vmem:[#allocation6] sm:$0xff]  ;;  %694 = vmatprep.subr.bf16.mxu0 %v784_v5  ;;  %v69_v7 = vsel %vm38_vm0, %v60_v4, 0  ;;  %685 = vmatprep.subr.bf16.mxu1 %v784_v5  ;;  %vm785_vm1 = vmmov 0   ;;  %v786_v10 = vmov 0.0  }
  0x15   :  { %v66_v6 = vsel %vm38_vm0, %v59_v3, 0  ;;  %v75_v9 = vand.u32 4294901760, %v69_v7  ;;  %668 = vmatprep.mubr.msk.f32.mxu0 %vm785_vm1, %v786_v10  ;;  %647 = vmatprep.mubr.msk.f32.mxu1 %vm785_vm1, %v786_v10  ;;  %v543_v23 = vld [vmem:[%s879_s3] sm:$0xff]  ;;  %v787_v24 = vmov 0   ;;  %vm54_vm4 = vcmask 7168  }
  0x16   :  { %v39_v2 = vsel %vm38_vm0, %v37_v1, 0.0  ;;  %v72_v8 = vand.u32 4294901760, %v66_v6  ;;  %721 = vset.pattern.permute.xlu0 %v787_v24  ;;  %722 = vset.pattern.permute.xlu1 %v787_v24  ;;  %57 = vst.msk [vmem:[#allocation5] sm:$0xff] %vm54_vm4, %v786_v10  ;;  %56 = vst.msk [vmem:[#allocation4] sm:$0xff] %vm54_vm4, %v786_v10  ;;  %v623_v45 = vld [vmem:[%s878_s2] ss:$0 sm:$0xff] }
  0x17   :  { %40 = vadd.xlane.f32.xlu0 %v39_v2  ;;  %v157_v13 = vsub.f32 %v69_v7, %v75_v9  ;;  %v540_v46 = vand.u32 127, %v539_v42  ;;  %vm553_vm6 = vcmask 130048   ;;  %v788_v57 = vmov -1e+30   ;;  %s789_s2 = smov [#allocation9]  }
  0x18   :  { %v686_v11 = vpack.c.bf16 %v75_v9, %v72_v8  ;;  %v150_v12 = vsub.f32 %v66_v6, %v72_v8  ;;  %55 = vst.msk [vmem:[#allocation3] sm:$0xff] %vm54_vm4, %v788_v57  ;;  %s614_s6 = sshll.u32 %s789_s2, 4  ;;  %s615_s6 = int_to_ptr.vmem [resolvable:$true] %s614_s6 }
  0x19   :  { %v158_v15 = vand.u32 4294901760, %v157_v13  ;;  %vm550_vm7 = vcmp.lt.s32.totalorder %v540_v46, 16  ;;  %s755_s7 = scalar_lea.vmem %s615_s6, 128  ;;  %p760_p9 = scmp.lt.s32.totalorder %s615_s6, %s615_s6 }
  0x1a   :  { %696 = vmatpush3.bf16.xpose.msra.mxu0 %v686_v11  ;;  %687 = vmatpush3.bf16.xpose.msra.mxu1 %v686_v11  ;;  %v151_v14 = vand.u32 4294901760, %v150_v12  ;;  %v692_v22 = vpack.c.bf16 %v157_v13, %v150_v12  ;;  %p756_p8 = scmp.ne.s32.totalorder %s615_s6, %s755_s7  ;;  %p761_p10 = scmp.lt.s32.totalorder %s755_s7, %s755_s7 }
  0x1b   :  { %697 = vmatprep.subr.bf16.mxu0 %v784_v5  ;;  %688 = vmatprep.subr.bf16.mxu1 %v784_v5  ;;  %v159_v18 = vsub.f32 %v157_v13, %v158_v15 }
  0x1c   :  { %v698_v16 = vpack.c.bf16 %v158_v15, %v151_v14  ;;  %v152_v17 = vsub.f32 %v150_v12, %v151_v14  ;;  %p762_p11 = por %p761_p10, %p760_p9 }
  0x1d   :  { %v160_v20 = vand.u32 4294901760, %v159_v18  ;;  %v577_v58 = vld [vmem:[#allocation5] sm:$0xff]  ;;  %v561_v8 = vld [vmem:[#allocation4] sm:$0xff] }
  0x1e   :  { %v153_v19 = vand.u32 4294901760, %v152_v17  ;;  %p763_p12 = pnand %p762_p11, %p756_p8 }
  0x1f   :  { %v552_v59 = vld [vmem:[#allocation3] sm:$0xff] }
  0x20   :  { %v689_v21 = vpack.c.bf16 %v160_v20, %v153_v19 }
  0x2d   :  { %545 = vperm.xlu0 %721, %v543_v23  }
  0xa4   :  { %v41_v25 = vpop.xlane.xlu0 %40 }
  0xa5   :  { %723 = vrsqrt.f32 %v41_v25  ;;  %vm44_vm2 = vcmp.eq.f32.partialorder %v41_v25, inf  ;;  %v47_v28 = vand.u32 2147483648, %v41_v25  ;;  %vm46_vm3 = vcmp.eq.f32.partialorder %v41_v25, 0.0 }
  0xac   :  { %v546_v49 = vpop.permute.xlu0 %545 }
  0xad   :  { %vm547_vm5 = vcmp.eq.s32.totalorder %v540_v46, %v546_v49 }
  0xaf   :  { %v724_v26 = vpop.eup %723 }
  0xb0   :  { %v43_v27 = vmul.f32 %v724_v26, %v41_v25 }
  0xb2   :  { %v45_v29 = vsel %vm44_vm2, %v41_v25, %v43_v27 }
  0xb3   :  { %v48_v30 = vsel %vm46_vm3, %v47_v28, %v45_v29 }
  0xb4   :  { %v49_v31 = vmax.f32 %v48_v30, 1e-05 }
  0xb6   :  { %725 = vrcp.f32 %v49_v31 }
  0xc0   :  { %v726_v32 = vpop.eup %725 }
  0xc1   :  { %v52_v33 = vmul.f32 %v726_v32, %v36_v0 }
  0xc3   :  { %53 = vst.msk [vmem:[#allocation2] sm:$0xff] %vm38_vm0, %v52_v33 }
  0xca   :  { %v58_v34 = vld [vmem:[#allocation2] sm:$0xff] }
  0xcb   :  { %v63_v35 = vsel %vm38_vm0, %v58_v34, 0 }
  0xcc   :  { %v138_v36 = vand.u32 4294901760, %v63_v35 }
  0xce   :  { %v139_v37 = vsub.f32 %v63_v35, %v138_v36 }
  0xd0   :  { %v140_v38 = vand.u32 4294901760, %v139_v37 }
  0xd2   :  { %669 = vmatmul.mubr.f32.vlgmr.msra.gmra.mrb[0].mxu0 %v140_v38  ;;  %v141_v39 = vsub.f32 %v139_v37, %v140_v38 }
  0xd3   :  { %699 = vmatpush3.bf16.xpose.msra.mxu0 %v698_v16  ;;  %675 = vmatprep.mubr.msk.f32.mxu0 %vm785_vm1, %v786_v10 }
  0xd4   :  { %v142_v40 = vand.u32 4294901760, %v141_v39  ;;  %700 = vmatprep.subr.bf16.mxu0 %v784_v5 }
  0xd6   :  { %648 = vmatmul.mubr.f32.vlgmr.msra.gmra.mrb[0].mxu1 %v142_v40 }
  0xd7   :  { %690 = vmatpush3.bf16.xpose.msra.mxu1 %v689_v21  ;;  %654 = vmatprep.mubr.msk.f32.mxu1 %vm785_vm1, %v786_v10 }
  0xd8   :  { %691 = vmatprep.subr.bf16.mxu1 %v784_v5 }
  0xda   :  { %676 = vmatmul.mubr.f32.vlgmr.msra.gmra.mrb[0].mxu0 %v138_v36 }
  0xdb   :  { %702 = vmatpush3.bf16.xpose.msra.mxu0 %v686_v11  ;;  %682 = vmatprep.mubr.msk.f32.mxu0 %vm785_vm1, %v786_v10 }
  0xde   :  { %655 = vmatmul.mubr.f32.vlgmr.msra.gmra.mrb[0].mxu1 %v138_v36 }
  0xdf   :  { %693 = vmatpush3.bf16.xpose.msra.mxu1 %v692_v22  ;;  %661 = vmatprep.mubr.msk.f32.mxu1 %vm785_vm1, %v786_v10 }
  0xe2   :  { %683 = vmatmul.mubr.f32.vlgmr.msra.gmra.mrb[0].mxu0 %v138_v36 }
  0xe6   :  { %662 = vmatmul.mubr.f32.vlgmr.msra.gmra.mrb[0].mxu1 %v139_v37 }
 0x1b5   :  { %v526_v41 = vpop.f32.mrb[0].mxu0 }
 0x1b6   :  { %v684_v43 = vpop.f32.mrb[1].mxu0 }
 0x1b9   :  { %v301_v44 = vpop.f32.mrb[0].mxu1 }
 0x1ba   :  { %v703_v47 = vadd.f32 %v526_v41, %v301_v44  ;;  %v663_v48 = vpop.f32.mrb[1].mxu1 }
 0x1bc   :  { %v537_v50 = vmul.f32 %v703_v47, %v623_v45 }
 0x1be   :  { %v624_v51 = vadd.f32 -25.6, %v537_v50 }
 0x1c0   :  { %v578_v52 = vsel %vm547_vm5, %v624_v51, 0.0  ;;  %v549_v53 = vsel %vm547_vm5, %v624_v51, %v537_v50 }
 0x1c1   :  { %v579_v54 = vsel %vm553_vm6, %v578_v52, 0.0  ;;  %v551_v55 = vsel %vm550_vm7, %v549_v53, -1e+30 }
 0x1c2   :  { %580 = vadd.xlane.f32.xlu0 %v579_v54  ;;  %v554_v56 = vsel %vm553_vm6, %v551_v55, -inf }
 0x1c3   :  { %555 = vmax.xlane.f32.xlu1 %v554_v56 }
 0x24f   :  { %v581_v60 = vpop.xlane.xlu0 %580 }
 0x250   :  { %v582_v61 = vadd.f32 %v581_v60, %v577_v58  ;;  %v556_v62 = vpop.xlane.xlu1 %555 }
 0x251   :  { %v557_v63 = vmax.f32 %v552_v59, %v556_v62 }
 0x252   :  { %583 = vst.msk [vmem:[#allocation5] sm:$0xff] %vm54_vm4, %v582_v61 }
 0x253   :  { %v558_v0 = vsub.f32 %v552_v59, %v557_v63  ;;  %584 = vst.msk [vmem:[#allocation3] sm:$0xff] %vm54_vm4, %v557_v63  ;;  %565 = vperm.xlu1 %722, %v557_v63  }
 0x255   :  { %v559_v6 = vmul.f32 1.442695, %v558_v0 }
 0x259   :  { %v593_v17 = vld [vmem:[#allocation5] sm:$0xff] }
 0x25a   :  { %v588_v15 = vld [vmem:[#allocation3] sm:$0xff] }
 0x2d2   :  { %v566_v1 = vpop.permute.xlu1 %565 }
 0x2d3   :  { %v568_v2 = vsub.f32 %v551_v55, %v566_v1 }
 0x2d5   :  { %v569_v3 = vmul.f32 1.442695, %v568_v2 }
 0x2d7   :  { %727 = vpow2.f32 %v569_v3 }
 0x2d8   :  { %729 = vpow2.f32 %v559_v6 }
 0x2e1   :  { %v728_v4 = vpop.eup %727 }
 0x2e2   :  { %v571_v5 = vsel %vm553_vm6, %v728_v4, 0.0  ;;  %v730_v7 = vpop.eup %729 }
 0x2e3   :  { %572 = vadd.xlane.f32.xlu1 %v571_v5  ;;  %v562_v9 = vmul.f32 %v730_v7, %v561_v8 }
 0x370   :  { %v573_v10 = vpop.xlane.xlu1 %572 }
 0x371   :  { %v574_v11 = vadd.f32 %v573_v10, %v562_v9 }
 0x373   :  { %576 = vst.msk [vmem:[#allocation4] sm:$0xff] %vm54_vm4, %v574_v11 }
 0x37a   :  { %v589_v12 = vld [vmem:[#allocation4] sm:$0xff] }
 0x37b   :  { %731 = vlog2.f32 %v589_v12 }
 0x385   :  { %v732_v13 = vpop.eup %731 }
 0x386   :  { %v591_v14 = vmul.f32 0.6931472, %v732_v13 }
 0x388   :  { %v592_v16 = vadd.f32 %v591_v14, %v588_v15 }
 0x38a   :  { %v594_v18 = vsub.f32 %v592_v16, %v593_v17 }
 0x38c   :  { %604 = vperm.xlu1 %722, %v594_v18  }
 0x40b   :  { %v605_v19 = vpop.permute.xlu1 %604 }
 0x40c   :  { %607 = vst [vmem:[#allocation9] sm:$0xff] %v605_v19 }
 0x40d   :  { %766 = shalt.err (!%p763_p12)
}
 0x40e   :  { %s767_s10 = scalar_lea.hbm %s880_s4, 128 }
 0x40f   :  { %p768_p13 = scmp.ne.s32.totalorder %s880_s4, %s767_s10  ;;  %p771_p0 = scmp.lt.u32.totalorder %s767_s10, %s880_s4 }
 0x411   :  { %p773_p1 = pnand %p771_p0, %p768_p13 }
 0x413   :  { %776 = shalt.err (!%p773_p1)
}
 0x414   :  { %617 = dma.vmem_to_hbm [thread:$0]  %s615_s6, 128, %s880_s4, [#allocation8]  }
 0x415   :  { %779 = dma.done.wait [#allocation8], 128  }
 0x416   :  { %780 = vsyncadd [#allocation8], 4294967168 }
 0x417   :  { %621 = vsyncpa [#allocation7], 1 }
 0x418   :  { %622 = vsyncpa [#allocation8], 1 }

</bundles_post_ra>
